<compile_context>
chip_gen: v7x
topology: tpu7x:2x2x1
jax: 0.10.0
libtpu: 0.0.40
codegen_flags: <defaults>
</compile_context>

<pallas_src>
import jax
import jax.numpy as jnp
from jax.experimental import pallas as pl
from jax.experimental.pallas import tpu as pltpu

_COL_CANDIDATES = (512, 256, 128)       # lane-dense widths, tried largest-first
_SUBLANE = {4: 8, 2: 16, 1: 32}         # sublane tile per itemsize (f32 / bf16 / int8)
_MIN_SPLIT_BYTES = 256 * 1024           # only split a single-block case when data is big enough
_TARGET_GRID = 4                        # >=2 blocks so v7x megacore can split the rows
_SMALL_RAGGED_BYTES = 4 * 1024 * 1024   # ragged inputs up to this size run as one 1-D block


# ----------------------------------------------------------------------------------------
# Pallas kernel (shared by the 2-D tiled path and the 1-D single-block path)
# ----------------------------------------------------------------------------------------
def h_sigmoid_kernel(x_ref, o_ref):
    """Elementwise h_sigmoid on one tile: relu6(x + 3) * (1/6)."""
    x = x_ref[...]
    y = jnp.minimum(jnp.maximum(x + 3.0, 0.0), 6.0) * (1.0 / 6.0)
    o_ref[...] = y.astype(o_ref.dtype)


# ----------------------------------------------------------------------------------------
# Generation-aware block sizing
# ----------------------------------------------------------------------------------------
def _round_up(a, m):
    return ((a + m - 1) // m) * m


def _tpu_generation():
    try:
        kind = jax.devices()[0].device_kind.lower()
    except Exception:
        return None
    for gen in ("v7", "v6", "v5"):
        if gen in kind:
            return gen
    return None


def _block_config():
    """Returns (target_block_bytes, vmem_limit_bytes_or_None) per TPU generation."""
    gen = _tpu_generation()
    if gen == "v7":
        # 64 MiB physical VMEM/TC: 4 MiB blocks, double-buffered in+out = 16 MiB; raise the
        # scoped limit explicitly so the compiler never silently shrinks the pipeline.
        return 4 * 1024 * 1024, 48 * 1024 * 1024
    if gen == "v6":
        # 32 MiB scoped default / 128 MiB physical: 4 MiB blocks fit comfortably.
        return 4 * 1024 * 1024, None
    # v5e (16 MiB scoped default) and unknown backends: stay conservative.
    return 2 * 1024 * 1024, None


# ----------------------------------------------------------------------------------------
# 2-D tiled path (no padding; boundary blocks are masked by Pallas)
# ----------------------------------------------------------------------------------------
def _h_sigmoid_2d(x2):
    rows, cols = x2.shape
    dtype = x2.dtype
    itemsize = dtype.itemsize
    sub = _SUBLANE.get(itemsize, 8)
    block_bytes, vmem_limit = _block_config()

    cap_rows = max(sub, (block_bytes // (cols * itemsize)) // sub * sub)
    if rows > cap_rows:
        block_rows = cap_rows
    elif rows * cols * itemsize >= _MIN_SPLIT_BYTES and rows >= _TARGET_GRID * sub:
        # Would otherwise be one block: split so both v7x TensorCores get work.
        block_rows = _round_up(pl.cdiv(rows, _TARGET_GRID), sub)
    else:
        block_rows = rows  # single block equal to the full array (always layout-legal)

    grid = pl.cdiv(rows, block_rows)

    cp_kwargs = dict(dimension_semantics=("parallel",))
    if vmem_limit is not None:
        cp_kwargs["vmem_limit_bytes"] = vmem_limit

    return pl.pallas_call(
        h_sigmoid_kernel,
        out_shape=jax.ShapeDtypeStruct((rows, cols), dtype),
        grid_spec=pltpu.PrefetchScalarGridSpec(
            num_scalar_prefetch=0,
            grid=(grid,),
            in_specs=[pl.BlockSpec((block_rows, cols), lambda i: (i, 0))],
            out_specs=pl.BlockSpec((block_rows, cols), lambda i: (i, 0)),
        ),
        compiler_params=pltpu.CompilerParams(**cp_kwargs),
    )(x2)


# ----------------------------------------------------------------------------------------
# Wrapper
# ----------------------------------------------------------------------------------------
def h_sigmoid(x):
    """h_sigmoid for an arbitrary-shaped array; all compute happens inside the kernel."""
    shape, dtype = x.shape, x.dtype
    n = x.size
    if n == 0:
        return x

    flat = x.reshape(-1)  # contiguous collapse: free (no HBM copy)

    # Fast path: pick the widest lane-dense column count that divides n -> zero padding,
    # zero extra copies (reshapes of a contiguous buffer are bitcasts).
    for cols in _COL_CANDIDATES:
        if n % cols == 0:
            out2 = _h_sigmoid_2d(flat.reshape(n // cols, cols))
            return out2.reshape(shape)

    # Ragged element count. Small tensors: one full-array 1-D block (block == full dim is
    # always legal), still no padding or extra copies.
    if n * dtype.itemsize <= _SMALL_RAGGED_BYTES:
        out = pl.pallas_call(
            h_sigmoid_kernel,
            out_shape=jax.ShapeDtypeStruct((n,), dtype),
        )(flat)
        return out.reshape(shape)

    # TODO(synk): big-and-ragged shapes (rare for feature maps) pay one pad+slice copy; a
    # masked-tail second kernel would remove it.
    n_pad = _round_up(n, 128)
    padded = jnp.pad(flat, (0, n_pad - n))
    out2 = _h_sigmoid_2d(padded.reshape(n_pad // 128, 128))
    return out2.reshape(-1)[:n].reshape(shape)


# ----------------------------------------------------------------------------------------
if __name__ == "__main__":
    key = jax.random.PRNGKey(0)
    k_main, k_odd = jax.random.split(key)

    # Small NCHW-style input consistent with how the neck applies h_sigmoid to feature maps.
    b, c, h, w = 2, 4, 16, 16
    x = 8.0 * jax.random.normal(k_main, (b, c, h, w), jnp.float32)  # spans the clamp range

    out = jax.block_until_ready(jax.jit(h_sigmoid)(x))
    ref = jnp.clip(x + 3.0, 0.0, 6.0) / 6.0
    assert out.shape == x.shape
    assert out.dtype == x.dtype
    assert bool(jnp.all(jnp.isfinite(out)))
    assert bool(jnp.max(jnp.abs(out - ref)) < 1e-6)

    # Ragged element count (n % 128 != 0): exercises the no-pad 1-D single-block path.
    x_odd = 8.0 * jax.random.normal(k_odd, (3, 5, 7), jnp.float32)
    out_odd = jax.block_until_ready(jax.jit(h_sigmoid)(x_odd))
    ref_odd = jnp.clip(x_odd + 3.0, 0.0, 6.0) / 6.0
    assert out_odd.shape == x_odd.shape
    assert bool(jnp.max(jnp.abs(out_odd - ref_odd)) < 1e-6)

    print("KERNEL_OK")
</pallas_src>

<mosaic_0001>
module attributes {stable_mosaic.version = 11 : i64} {
  func.func @h_sigmoid_kernel(%arg0: i32, %arg1: memref<4x512xf32, #tpu.memory_space<vmem>>, %arg2: memref<4x512xf32, #tpu.memory_space<vmem>>) attributes {dimension_semantics = [#tpu.dimension_semantics<parallel>], iteration_bounds = array<i64: 1>, scalar_prefetch = 0 : i64, scratch_operands = 0 : i64, tpu.core_type = #tpu.core_type<tc>, window_params = [{transform_indices = @transform_0, window_bounds = array<i64: 4, 512>}, {transform_indices = @transform_1, window_bounds = array<i64: 4, 512>}]} {
    %c0 = arith.constant 0 : index
    %c0_0 = arith.constant 0 : index
    %0 = vector.load %arg1[%c0, %c0_0] : memref<4x512xf32, #tpu.memory_space<vmem>>, vector<4x512xf32>
    %cst = arith.constant 3.000000e+00 : f32
    %1 = vector.broadcast %cst : f32 to vector<4x512xf32>
    %2 = arith.addf %0, %1 : vector<4x512xf32>
    %cst_1 = arith.constant 0.000000e+00 : f32
    %3 = vector.broadcast %cst_1 : f32 to vector<4x512xf32>
    %4 = arith.maximumf %2, %3 : vector<4x512xf32>
    %cst_2 = arith.constant 6.000000e+00 : f32
    %5 = vector.broadcast %cst_2 : f32 to vector<4x512xf32>
    %6 = arith.minimumf %4, %5 : vector<4x512xf32>
    %cst_3 = arith.constant 0.166666672 : f32
    %7 = vector.broadcast %cst_3 : f32 to vector<4x512xf32>
    %8 = arith.mulf %6, %7 : vector<4x512xf32>
    %c0_4 = arith.constant 0 : index
    %c0_5 = arith.constant 0 : index
    %9 = vector.load %arg2[%c0_4, %c0_5] : memref<4x512xf32, #tpu.memory_space<vmem>>, vector<4x512xf32>
    tpu.vector_store %arg2[%c0_4, %c0_5], %8 {strides = array<i32>} : memref<4x512xf32, #tpu.memory_space<vmem>>, vector<4x512xf32>,
    return
  }
  func.func @transform_0(%arg0: i32) -> (i32, i32) {
    %c0_i32 = arith.constant 0 : i32
    %c0_i32_0 = arith.constant 0 : i32
    return %arg0, %c0_i32 : i32, i32
  }
  func.func @transform_1(%arg0: i32) -> (i32, i32) {
    %c0_i32 = arith.constant 0 : i32
    %c0_i32_0 = arith.constant 0 : i32
    return %arg0, %c0_i32 : i32, i32
  }
}

</mosaic_0001>

<bundles_post_ra>
// kernel: h_sigmoid.1
= control target key start
LH: loop header
LB: loop body
LE: loop exit
PB: predicated region body
PF: predicated region fallthrough
CT: control target
= control target key end

     0   :  { %s46_s0 = inlined_call_operand.vmem [shape: f32[4,512], index: 0, kind: input, shape index: {}]   ;;  %s47_s1 = inlined_call_operand.vmem [shape: f32[4,512], index: 1, kind: output, shape index: {}]  }
   0x1   :  { %v8_v0 = vld [vmem:[%s46_s0] sm:$0xff]  ;;  %v9_v1 = vld [vmem:[%s46_s0 + $0x8] sm:$0xff] }
   0x2   :  { %v10_v2 = vadd.f32 3.0, %v8_v0  ;;  %v11_v3 = vadd.f32 3.0, %v9_v1 }
   0x4   :  { %v12_v4 = vmax.f32 %v10_v2, 0.0  ;;  %v13_v5 = vmax.f32 %v11_v3, 0.0 }
   0x6   :  { %v14_v6 = vmin.f32 %v12_v4, 6.0  ;;  %v15_v7 = vmin.f32 %v13_v5, 6.0 }
   0x8   :  { %v16_v8 = vmul.f32 0.16666667, %v14_v6  ;;  %v17_v9 = vmul.f32 0.16666667, %v15_v7 }
   0xa   :  { %18 = vst [vmem:[%s47_s1] sm:$0xff] %v16_v8  ;;  %19 = vst [vmem:[%s47_s1 + $0x8] sm:$0xff] %v17_v9 }

</bundles_post_ra>
